<compile_context>
chip_gen: v7x
topology: tpu7x:2x2x1
jax: 0.10.0
libtpu: 0.0.40
codegen_flags: <defaults>
</compile_context>

<pallas_src>
import functools

import jax
import jax.numpy as jnp
from jax.experimental import pallas as pl
from jax.experimental.pallas import tpu as pltpu


def _add_norm_kernel(x_ref, r_ref, g_ref, b_ref, o_ref, *, eps, valid_h, padded_h):
    # x_ref/r_ref/o_ref: (tile_rows, padded_h); g_ref/b_ref: (1, padded_h) f32.
    s = x_ref[...].astype(jnp.float32) + r_ref[...].astype(jnp.float32)
    if valid_h != padded_h:
        # Padded lanes of x/residual are zero, so the plain sum is already the
        # sum over the valid lanes; only the centered term needs masking so the
        # padded lanes do not contribute to the variance.
        lane = jax.lax.broadcasted_iota(jnp.int32, s.shape, dimension=1)
        mean = jnp.sum(s, axis=-1, keepdims=True) * (1.0 / valid_h)
        centered = jnp.where(lane < valid_h, s - mean, 0.0)
    else:
        mean = jnp.mean(s, axis=-1, keepdims=True)
        centered = s - mean
    var = jnp.sum(centered * centered, axis=-1, keepdims=True) * (1.0 / valid_h)
    inv = jax.lax.rsqrt(var + eps)
    o_ref[...] = (centered * inv * g_ref[...] + b_ref[...]).astype(o_ref.dtype)


def _round_up(n, m):
    return ((n + m - 1) // m) * m


def _physical_vmem_bytes():
    """Physical VMEM per core; conservative 64 MiB fallback (v7x) if unknown."""
    try:
        info = pltpu.get_tpu_info()
        cap = getattr(info, "vmem_capacity_bytes", None)
        if cap:
            return int(cap)
    except Exception:
        pass
    return 64 * 1024 * 1024


def _pick_tile_rows(rows, h_pad, itemsize, vmem_cap_bytes,
                    target_block_hbm_bytes=4 * 1024 * 1024,
                    min_grid_steps=4):
    """Row tile (multiple of 8) sized by HBM bytes/step, VMEM, and TC parallelism."""
    # (a) Amortize per-step overhead: ~4 MiB of HBM traffic per streaming array
    #     per step, measured in the input dtype (bf16 gets ~2x the rows of f32).
    tile_hbm = max(8, target_block_hbm_bytes // (h_pad * itemsize))
    # (b) Fit VMEM: 3 streaming arrays x 2 buffers (input dtype) + ~3 f32 temps.
    vmem_budget = min(int(vmem_cap_bytes * 0.6), 48 * 1024 * 1024)
    per_row_bytes = h_pad * (6 * itemsize + 3 * 4)
    tile_vmem = max(8, vmem_budget // per_row_bytes)
    # (c) Keep >= min_grid_steps grid steps so both v7x TensorCores get work.
    tile_parallel = max(8, -(-rows // min_grid_steps))
    tile = min(tile_hbm, tile_vmem, tile_parallel)
    tile = max(8, (tile // 8) * 8)          # sublane multiple
    rows_up = _round_up(rows, 8)            # never exceed the (padded) row count
    return min(tile, rows_up)


def add_norm(x, residual, gamma, beta, *, eps=1e-5, tile_rows=None):
    """x, residual: [B, S, H]; gamma, beta: [H]. Returns LayerNorm(x + residual)."""
    B, S, H = x.shape
    rows = B * S
    H_pad = _round_up(H, 128)               # lane-dense stores
    itemsize = jnp.dtype(x.dtype).itemsize
    vmem_cap = _physical_vmem_bytes()

    if tile_rows is None:
        tile_rows = _pick_tile_rows(rows, H_pad, itemsize, vmem_cap)

    x2 = x.reshape(rows, H)
    r2 = residual.reshape(rows, H)
    g2 = gamma.reshape(1, H).astype(jnp.float32)
    b2 = beta.reshape(1, H).astype(jnp.float32)
    if H_pad != H:
        x2 = jnp.pad(x2, ((0, 0), (0, H_pad - H)))
        r2 = jnp.pad(r2, ((0, 0), (0, H_pad - H)))
        g2 = jnp.pad(g2, ((0, 0), (0, H_pad - H)))
        b2 = jnp.pad(b2, ((0, 0), (0, H_pad - H)))

    grid = (pl.cdiv(rows, tile_rows),)      # partial tail block masked by Pallas

    # VMEM budget: double-buffered {x, r, out} tiles in input dtype, ~3 f32
    # in-kernel temporaries, resident gamma/beta, plus compiler scratch slack.
    block_elems = tile_rows * H_pad
    est = (6 * block_elems * itemsize
           + 3 * block_elems * 4
           + 4 * H_pad * 4
           + (2 << 20))
    vmem_limit = min(max(32 * 1024 * 1024, int(est * 1.25)),
                     vmem_cap - (4 << 20))
    vmem_limit = max(vmem_limit, 16 * 1024 * 1024)

    cost = pl.CostEstimate(
        flops=8 * rows * H_pad,
        transcendentals=rows,                                   # one rsqrt per row
        bytes_accessed=3 * rows * H_pad * itemsize + 2 * H_pad * 4,
    )

    out = pl.pallas_call(
        functools.partial(_add_norm_kernel, eps=eps, valid_h=H, padded_h=H_pad),
        out_shape=jax.ShapeDtypeStruct((rows, H_pad), x.dtype),
        grid_spec=pltpu.PrefetchScalarGridSpec(
            num_scalar_prefetch=0,
            grid=grid,
            in_specs=[
                pl.BlockSpec((tile_rows, H_pad), lambda i: (i, 0)),
                pl.BlockSpec((tile_rows, H_pad), lambda i: (i, 0)),
                pl.BlockSpec((1, H_pad), lambda i: (0, 0)),   # gamma: VMEM-resident
                pl.BlockSpec((1, H_pad), lambda i: (0, 0)),   # beta:  VMEM-resident
            ],
            out_specs=pl.BlockSpec((tile_rows, H_pad), lambda i: (i, 0)),
        ),
        compiler_params=pltpu.CompilerParams(
            dimension_semantics=("parallel",),
            vmem_limit_bytes=vmem_limit,
        ),
        cost_estimate=cost,
    )(x2, r2, g2, b2)

    if H_pad != H:
        out = out[:, :H]
    return out.reshape(B, S, H)


def _reference(x, residual, gamma, beta, eps):
    s = (x + residual).astype(jnp.float32)
    mean = jnp.mean(s, axis=-1, keepdims=True)
    var = jnp.mean((s - mean) ** 2, axis=-1, keepdims=True)
    y = (s - mean) * jax.lax.rsqrt(var + eps) * gamma.astype(jnp.float32) + beta.astype(jnp.float32)
    return y.astype(x.dtype)


if __name__ == "__main__":
    key = jax.random.PRNGKey(0)

    # Small shapes consistent with the module: batch=2, seq=8, embed_dim=32.
    B, S, H = 2, 8, 32
    kx, kr = jax.random.split(key)
    x = jax.random.normal(kx, (B, S, H), dtype=jnp.float32)
    residual = jax.random.normal(kr, (B, S, H), dtype=jnp.float32)

    # nn.LayerNorm deterministic init: weight = ones, bias = zeros.
    gamma = jnp.ones((H,), dtype=jnp.float32)
    beta = jnp.zeros((H,), dtype=jnp.float32)

    out = add_norm(x, residual, gamma, beta, eps=1e-5)
    jax.block_until_ready(out)
    ref = _reference(x, residual, gamma, beta, 1e-5)
    assert jnp.allclose(out, ref, atol=1e-5, rtol=1e-5), "mismatch vs reference (H=32)"

    # Non-divisible row count (rows = 15, partial tail block masked).
    B2, S2 = 3, 5
    kx2, kr2 = jax.random.split(kr)
    x2 = jax.random.normal(kx2, (B2, S2, H), dtype=jnp.float32)
    r2 = jax.random.normal(kr2, (B2, S2, H), dtype=jnp.float32)
    out2 = add_norm(x2, r2, gamma, beta, eps=1e-5)
    jax.block_until_ready(out2)
    ref2 = _reference(x2, r2, gamma, beta, 1e-5)
    assert jnp.allclose(out2, ref2, atol=1e-5, rtol=1e-5), "mismatch (ragged rows)"

    # Lane-dense path with non-trivial affine params and bf16 inputs (H % 128 == 0).
    B3, S3, H3 = 2, 16, 256
    kx3, kr3, kg3, kb3 = jax.random.split(kr2, 4)
    x3 = jax.random.normal(kx3, (B3, S3, H3), dtype=jnp.bfloat16)
    r3 = jax.random.normal(kr3, (B3, S3, H3), dtype=jnp.bfloat16)
    g3 = (1.0 + 0.1 * jax.random.normal(kg3, (H3,))).astype(jnp.float32)
    b3 = (0.1 * jax.random.normal(kb3, (H3,))).astype(jnp.float32)
    out3 = add_norm(x3, r3, g3, b3, eps=1e-5)
    jax.block_until_ready(out3)
    ref3 = _reference(x3, r3, g3, b3, 1e-5)
    assert jnp.allclose(out3.astype(jnp.float32), ref3.astype(jnp.float32),
                        atol=2e-2, rtol=2e-2), "mismatch (bf16, H=256)"

    print("KERNEL_OK")
</pallas_src>

<mosaic_0001>
module attributes {stable_mosaic.version = 11 : i64} {
  func.func @_add_norm_kernel(%arg0: i32, %arg1: memref<8x128xf32, #tpu.memory_space<vmem>>, %arg2: memref<8x128xf32, #tpu.memory_space<vmem>>, %arg3: memref<1x128xf32, #tpu.memory_space<vmem>>, %arg4: memref<1x128xf32, #tpu.memory_space<vmem>>, %arg5: memref<8x128xf32, #tpu.memory_space<vmem>>) attributes {dimension_semantics = [#tpu.dimension_semantics<parallel>], iteration_bounds = array<i64: 2>, scalar_prefetch = 0 : i64, scratch_operands = 0 : i64, tpu.core_type = #tpu.core_type<tc>, window_params = [{transform_indices = @transform_0, window_bounds = array<i64: 8, 128>}, {transform_indices = @transform_1, window_bounds = array<i64: 8, 128>}, {pipeline_mode = #tpu.pipeline_mode<synchronous>, transform_indices = @transform_2, window_bounds = array<i64: 1, 128>}, {pipeline_mode = #tpu.pipeline_mode<synchronous>, transform_indices = @transform_3, window_bounds = array<i64: 1, 128>}, {transform_indices = @transform_4, window_bounds = array<i64: 8, 128>}]} {
    %c0 = arith.constant 0 : index
    %c0_0 = arith.constant 0 : index
    %0 = vector.load %arg1[%c0, %c0_0] : memref<8x128xf32, #tpu.memory_space<vmem>>, vector<8x128xf32>
    %c0_1 = arith.constant 0 : index
    %c0_2 = arith.constant 0 : index
    %1 = vector.load %arg2[%c0_1, %c0_2] : memref<8x128xf32, #tpu.memory_space<vmem>>, vector<8x128xf32>
    %2 = arith.addf %0, %1 : vector<8x128xf32>
    %3 = tpu.iota {dimensions = array<i32: 1>} : vector<8x128xi32>
    %cst = arith.constant dense<0.000000e+00> : vector<8xf32>
    %4 = vector.multi_reduction <add>, %2, %cst [1] : vector<8x128xf32> to vector<8xf32>
    %5 = vector.shape_cast %4 : vector<8xf32> to vector<8x1xf32>
    %cst_3 = arith.constant 3.125000e-02 : f32
    %6 = vector.broadcast %cst_3 : f32 to vector<8x1xf32>
    %7 = arith.mulf %5, %6 : vector<8x1xf32>
    %c32_i32 = arith.constant 32 : i32
    %8 = vector.broadcast %c32_i32 : i32 to vector<8x128xi32>
    %9 = arith.cmpi slt, %3, %8 : vector<8x128xi32>
    %10 = vector.broadcast %7 : vector<8x1xf32> to vector<8x128xf32>
    %11 = arith.subf %2, %10 : vector<8x128xf32>
    %cst_4 = arith.constant 0.000000e+00 : f32
    %12 = vector.broadcast %cst_4 : f32 to vector<8x128xf32>
    %13 = arith.select %9, %11, %12 : vector<8x128xi1>, vector<8x128xf32>
    %14 = arith.mulf %13, %13 : vector<8x128xf32>
    %cst_5 = arith.constant dense<0.000000e+00> : vector<8xf32>
    %15 = vector.multi_reduction <add>, %14, %cst_5 [1] : vector<8x128xf32> to vector<8xf32>
    %16 = vector.shape_cast %15 : vector<8xf32> to vector<8x1xf32>
    %cst_6 = arith.constant 3.125000e-02 : f32
    %17 = vector.broadcast %cst_6 : f32 to vector<8x1xf32>
    %18 = arith.mulf %16, %17 : vector<8x1xf32>
    %cst_7 = arith.constant 9.99999974E-6 : f32
    %19 = vector.broadcast %cst_7 : f32 to vector<8x1xf32>
    %20 = arith.addf %18, %19 : vector<8x1xf32>
    %21 = math.rsqrt %20 : vector<8x1xf32>
    %22 = vector.broadcast %21 : vector<8x1xf32> to vector<8x128xf32>
    %23 = arith.mulf %13, %22 : vector<8x128xf32>
    %c0_8 = arith.constant 0 : index
    %c0_9 = arith.constant 0 : index
    %24 = vector.load %arg3[%c0_8, %c0_9] : memref<1x128xf32, #tpu.memory_space<vmem>>, vector<1x128xf32>
    %25 = vector.broadcast %24 : vector<1x128xf32> to vector<8x128xf32>
    %26 = arith.mulf %23, %25 : vector<8x128xf32>
    %c0_10 = arith.constant 0 : index
    %c0_11 = arith.constant 0 : index
    %27 = vector.load %arg4[%c0_10, %c0_11] : memref<1x128xf32, #tpu.memory_space<vmem>>, vector<1x128xf32>
    %28 = vector.broadcast %27 : vector<1x128xf32> to vector<8x128xf32>
    %29 = arith.addf %26, %28 : vector<8x128xf32>
    %c0_12 = arith.constant 0 : index
    %c0_13 = arith.constant 0 : index
    %30 = vector.load %arg5[%c0_12, %c0_13] : memref<8x128xf32, #tpu.memory_space<vmem>>, vector<8x128xf32>
    tpu.vector_store %arg5[%c0_12, %c0_13], %29 {strides = array<i32>} : memref<8x128xf32, #tpu.memory_space<vmem>>, vector<8x128xf32>,
    return
  }
  func.func @transform_0(%arg0: i32) -> (i32, i32) {
    %c0_i32 = arith.constant 0 : i32
    %c0_i32_0 = arith.constant 0 : i32
    return %arg0, %c0_i32 : i32, i32
  }
  func.func @transform_1(%arg0: i32) -> (i32, i32) {
    %c0_i32 = arith.constant 0 : i32
    %c0_i32_0 = arith.constant 0 : i32
    return %arg0, %c0_i32 : i32, i32
  }
  func.func @transform_2(%arg0: i32) -> (i32, i32) {
    %c0_i32 = arith.constant 0 : i32
    %c0_i32_0 = arith.constant 0 : i32
    %c0_i32_1 = arith.constant 0 : i32
    return %c0_i32, %c0_i32_0 : i32, i32
  }
  func.func @transform_3(%arg0: i32) -> (i32, i32) {
    %c0_i32 = arith.constant 0 : i32
    %c0_i32_0 = arith.constant 0 : i32
    %c0_i32_1 = arith.constant 0 : i32
    return %c0_i32, %c0_i32_0 : i32, i32
  }
  func.func @transform_4(%arg0: i32) -> (i32, i32) {
    %c0_i32 = arith.constant 0 : i32
    %c0_i32_0 = arith.constant 0 : i32
    return %arg0, %c0_i32 : i32, i32
  }
}

</mosaic_0001>

<bundles_post_ra>
// kernel: tpu_custom_call.1
= control target key start
LH: loop header
LB: loop body
LE: loop exit
PB: predicated region body
PF: predicated region fallthrough
CT: control target
= control target key end

     0   :  { %9 = vsyncpa [#allocation3], 0  ;;  %s842_s0 = inlined_call_operand.hbm [shape: f32[16,128], index: 0, kind: input, shape index: {}]   ;;  %s843_s1 = inlined_call_operand.hbm [shape: f32[16,128], index: 1, kind: input, shape index: {}]   ;;  %s844_s2 = inlined_call_operand.vmem [shape: f32[1,128], index: 2, kind: input, shape index: {}]   ;;  %s845_s3 = inlined_call_operand.vmem [shape: f32[1,128], index: 3, kind: input, shape index: {}]   ;;  %s846_s4 = inlined_call_operand.hbm [shape: f32[16,128], index: 4, kind: output, shape index: {}]  }
   0x1   :  { %11 = vsyncpa [#allocation3 + $0x1], 0 }
   0x2   :  { %12 = vsyncpa [#allocation6], 0 }
   0x3   :  { %14 = vsyncpa [#allocation6 + $0x1], 0 }
   0x4   :  { %15 = vsyncpa [#allocation4], 0 }
   0x5   :  { %17 = vsyncpa [#allocation4 + $0x1], 0  ;;  %s622_s15 = smov 0   ;;  %s624_s16 = smov 0  }
   0x6   :  { %s626_s17 = smov 0   ;;  %s628_s18 = smov 0  }
   0x7 LB: > { %s643_s19 = sadd.s32 4294967295, %s592_s18   ;;  %s392_s20 = sadd.s32 4294967294, %s592_s18   ;;  %s592_s18 = sphi %s628_s18, %s865_s18   ;;  %s588_s17 = sphi %s626_s17, %s864_s17   ;;  %s584_s16 = sphi %s624_s16, %s863_s16   ;;  %s580_s15 = sphi %s622_s15, %s862_s15  }
   0x8   : > { %s647_s21 = sadd.s32 1, %s592_s18   ;;  %s30_s22 = sadd.s32 1, %s588_s17 }
   0x9   : > { %s27_s23 = ssub.s32 %s592_s18, %s647_s21  ;;  %p37_p0 = scmp.ne.s32.totalorder %s588_s17, %s584_s16 }
   0xa   : > { %p28_p1 = scmp.eq.s32.totalorder %s27_s23, 0  ;;  %p38_p2 = scmp.eq.s32.totalorder %s592_s18, 0 }
   0xb   : > { %p43_p3 = scmp.ne.s32.totalorder %s584_s16, %s580_s15  ;;  %p44_p4 = scmp.eq.s32.totalorder %s643_s19, 0 }
   0xc   : > { %s659_s24 = scalar_select %p28_p1, %s588_s17, %s30_s22  }
   0xd   : > { %p661_p5 = por %p38_p2, %p37_p0  ;;  %p665_p6 = por %p44_p4, %p43_p3 }
   0xe   : > { %p135_p7 = scmp.eq.s32.totalorder %s643_s19, 1  ;;  %p141_p8 = scmp.eq.s32.totalorder %s392_s20, 1 }
   0xf   : > { %s850_s26 = scalar_select %p665_p6, 1, 0 }
  0x10   : > { %p426_p10 = scmp.lt.s32.totalorder %s592_s18, 2  ;;  %p672_p11 = por %p135_p7, %p37_p0 }
  0x11   : > { %p676_p12 = por %p141_p8, %p43_p3  ;;  %s681_s29 = sand.u32 1, %s588_s17  }
  0x12   : > { %s851_s27 = scalar_select %p672_p11, 1, 0 }
  0x13   : > { %s852_s28 = scalar_select %p676_p12, 1, 0 }
  0x14   : > { %s396_s30 = sshll.u32 %s592_s18, 7  ;;  %s395_s5 = sshll.u32 %s681_s29, 3 }
  0x15   : > { %s690_s8 = scalar_lea.hbm %s842_s0, %s396_s30  ;;  %s171_s9 = scalar_lea.vmem [#allocation2], %s395_s5 }
  0x16   : > { %s178_s10 = sshll.u32 %s171_s9, 4  ;;  %p696_p13 = pnand %p426_p10, %p661_p5  ;;  %s700_s10 = int_to_ptr.vmem [resolvable:$true] %s178_s10 }
  0x17   : > { %s168_s12 = scalar_lea.sflag [#allocation3], %s681_s29  ;;  %s462_s13 = scalar_lea.hbm %s690_s8, 128 }
  0x18   : > { %p463_p2 = scmp.ne.s32.totalorder %s690_s8, %s462_s13  ;;  %p464_p3 = pneg %p696_p13 }
  0x19   : > { %s467_s22 = scalar_lea.hbm %s842_s0, 256  ;;  %p468_p5 = scmp.lt.u32.totalorder %s690_s8, %s842_s0 }
  0x1a   : > { %p465_p4 = pnand %p464_p3, %p463_p2  ;;  %p469_p8 = scmp.lt.u32.totalorder %s467_s22, %s462_s13 }
  0x1b   : > { %p471_p9 = scmp.lt.u32.totalorder %s462_s13, %s690_s8 }
  0x1c   : > { %p466_p7 = pneg %p465_p4  ;;  %p470_p10 = por %p469_p8, %p468_p5 }
  0x1e   : > { %p472_p0 = por %p471_p9, %p470_p10 }
  0x20   : > { %p473_p1 = pnand %p472_p0, %p466_p7 }
  0x22   : > { %476 = shalt.err (!%p473_p1)
}
  0x23   : > { %s477_s6 = scalar_lea.vmem %s700_s10, 128  ;;  %s594_s7 = smov [#allocation2]  }
  0x24   : > { %p478_p2 = scmp.ne.s32.totalorder %s700_s10, %s477_s6  ;;  %s482_s9 = sshll.u32 %s594_s7, 4  ;;  %s483_s9 = int_to_ptr.vmem [resolvable:$false] %s482_s9 }
  0x25   : > { %s484_s14 = scalar_lea.vmem %s483_s9, 256  ;;  %p485_p11 = scmp.lt.s32.totalorder %s700_s10, %s483_s9 }
  0x26   : > { %p480_p4 = pnand %p478_p2, %p464_p3  ;;  %p486_p5 = scmp.lt.s32.totalorder %s484_s14, %s477_s6 }
  0x28   : > { %p481_p12 = pneg %p480_p4  ;;  %p487_p8 = por %p486_p5, %p485_p11 }
  0x2a   : > { %p488_p9 = pnand %p487_p8, %p481_p12 }
  0x2c   : > { %491 = shalt.err (!%p488_p9)
}
  0x2d   : > { %418 = dma.hbm_to_vmem [thread:$0]  (!%p696_p13), %s690_s8, 128, %s700_s10, %s168_s12  }
  0x2e   : > { %p854_p0 = scmp.lt.s32.totalorder %s592_s18, 3  ;;  %p855_p1 = scmp.ge.s32.totalorder %s592_s18, 1 }
  0x2f   : > { %s743_s23 = scalar_lea.hbm %s843_s1, %s396_s30  ;;  %s189_s25 = scalar_lea.vmem [#allocation5], %s395_s5 }
  0x30   : > { %p734_p7 = pnand %p855_p1, %p854_p0  ;;  %s196_s6 = sshll.u32 %s189_s25, 4  ;;  %s197_s6 = int_to_ptr.vmem [resolvable:$true] %s196_s6 }
  0x31   : > { %s186_s8 = scalar_lea.sflag [#allocation6], %s681_s29  ;;  %s492_s10 = scalar_lea.hbm %s743_s23, 128 }
  0x32   : > { %s856_s13 = scalar_select %p734_p7, 1, 0 }
  0x33   : > { %p493_p11 = scmp.ne.s32.totalorder %s743_s23, %s492_s10  ;;  %s497_s30 = scalar_lea.hbm %s843_s1, 256 }
  0x34   : > { %p498_p2 = scmp.lt.u32.totalorder %s743_s23, %s843_s1  ;;  %p499_p4 = scmp.lt.u32.totalorder %s497_s30, %s492_s10 }
  0x35   : > { %p495_p12 = pnand %p493_p11, %p464_p3  ;;  %p501_p8 = scmp.lt.u32.totalorder %s492_s10, %s743_s23 }
  0x36   : > { %p500_p5 = por %p499_p4, %p498_p2 }
  0x37   : > { %p496_p10 = pneg %p495_p12 }
  0x38   : > { %p502_p9 = por %p501_p8, %p500_p5 }
  0x3a   : > { %p503_p0 = pnand %p502_p9, %p496_p10 }
  0x3c   : > { %506 = shalt.err (!%p503_p0)
}
  0x3d   : > { %s507_s29 = scalar_lea.vmem %s197_s6, 128  ;;  %s595_s5 = smov [#allocation5]  }
  0x3e   : > { %p508_p1 = scmp.ne.s32.totalorder %s197_s6, %s507_s29  ;;  %s512_s20 = sshll.u32 %s595_s5, 4  ;;  %s513_s20 = int_to_ptr.vmem [resolvable:$false] %s512_s20 }
  0x3f   : > { %s514_s22 = scalar_lea.vmem %s513_s20, 256  ;;  %p515_p6 = scmp.lt.s32.totalorder %s197_s6, %s513_s20 }
  0x40   : > { %p510_p11 = pnand %p508_p1, %p464_p3  ;;  %p516_p7 = scmp.lt.s32.totalorder %s514_s22, %s507_s29 }
  0x42   : > { %p511_p12 = pneg %p510_p11  ;;  %p517_p2 = por %p516_p7, %p515_p6 }
  0x44   : > { %p518_p4 = pnand %p517_p2, %p511_p12 }
  0x46   : > { %521 = shalt.err (!%p518_p4)
}
  0x47   : > { %421 = dma.hbm_to_vmem [thread:$0]  (!%p696_p13), %s743_s23, 128, %s197_s6, %s186_s8  }
  0x48   : > { %p857_p10 = scmp.ne.s32.totalorder %s856_s13, 0 }
  0x49   : > { %s770_s25 = sand.u32 (!%p857_p10), 1, %s584_s16   ;;  %p858_p6 = scmp.ne.s32.totalorder (!%p857_p10), %s850_s26, 0 }
  0x4a   : > { %205 = sbr.rel (%p857_p10) target bundleno = 413 (0x19d), region = 36  ;;  %s773_s10 = sshll.u32 (!%p857_p10), %s770_s25, 3 }
  0x4b   : > { %s208_s12 = scalar_lea.sflag (!%p857_p10), [#allocation3], %s770_s25  ;;  %s211_s7 = scalar_lea.vmem (!%p857_p10), [#allocation2], %s773_s10 }
  0x51   : > { %567 = dma.done.wait (%p858_p6), %s208_s12, 128  }
  0x52   : > { %569 = vsyncadd (%p858_p6), %s208_s12, 4294967168  ;;  %s217_s11 = scalar_lea.sflag [#allocation6], %s770_s25  ;;  %s220_s13 = scalar_lea.vmem [#allocation5], %s773_s10 }
  0x53   : > { %571 = dma.done.wait (%p858_p6), %s217_s11, 128  }
  0x54   : > { %573 = vsyncadd (%p858_p6), %s217_s11, 4294967168  ;;  %v250_v0 = vld [vmem:[%s211_s7] sm:$0xff]  ;;  %v251_v1 = vld [vmem:[%s220_s13] sm:$0xff]  ;;  %v253_v3 = vlaneseq  ;;  %s406_s30 = sshll.u32 %s643_s19, 7  ;;  %s249_s9 = scalar_lea.vmem [#allocation7], %s773_s10 }
  0x55   : > { %v252_v2 = vadd.f32 %v251_v1, %v250_v0  ;;  %v403_v14 = vld [vmem:[%s844_s2] ss:$0 sm:$0xff]  ;;  %s299_s14 = sshll.u32 %s249_s9, 4  ;;  %s798_s20 = scalar_lea.hbm %s846_s4, %s406_s30  ;;  %s800_s14 = int_to_ptr.vmem [resolvable:$true] %s299_s14 }
  0x56   : > { %v254_v4 = vand.u32 127, %v253_v3  ;;  %v404_v16 = vld [vmem:[%s845_s3] ss:$0 sm:$0xff]  ;;  %s286_s22 = scalar_lea.sflag [#allocation4], %s770_s25  ;;  %s522_s12 = scalar_lea.vmem %s800_s14, 128 }
  0x57   : > { %255 = vadd.xlane.f32.xlu0 %v252_v2  ;;  %p523_p13 = scmp.ne.s32.totalorder %s800_s14, %s522_s12  ;;  %p859_p3 = scmp.ne.s32.totalorder %s851_s27, 0 }
  0x58   : > { %vm258_vm0 = vcmp.lt.s32.totalorder %v254_v4, 32  ;;  %s596_s19 = smov [#allocation7]  }
  0x59   : > { %p524_p7 = pnand %p523_p13, %p859_p3  ;;  %s526_s10 = sshll.u32 %s596_s19, 4  ;;  %s527_s10 = int_to_ptr.vmem [resolvable:$false] %s526_s10 }
  0x5a   : > { %s528_s7 = scalar_lea.vmem %s527_s10, 256  ;;  %p529_p8 = scmp.lt.s32.totalorder %s800_s14, %s527_s10 }
  0x5b   : > { %p525_p5 = pneg %p524_p7  ;;  %p530_p9 = scmp.lt.s32.totalorder %s528_s7, %s522_s12 }
  0x5d   : > { %p531_p0 = por %p530_p9, %p529_p8 }
  0x5f   : > { %p532_p1 = pnand %p531_p0, %p525_p5 }
  0xe4   : > { %v256_v5 = vpop.xlane.xlu0 %255 }
  0xe5   : > { %v257_v6 = vmul.f32 0.03125, %v256_v5 }
  0xe7   : > { %v259_v7 = vsub.f32 %v252_v2, %v257_v6 }
  0xe9   : > { %v260_v8 = vsel %vm258_vm0, %v259_v7, 0.0 }
  0xea   : > { %v261_v9 = vmul.f32 %v260_v8, %v260_v8 }
  0xec   : > { %262 = vadd.xlane.f32.xlu0 %v261_v9 }
 0x179   : > { %v263_v10 = vpop.xlane.xlu0 %262 }
 0x17a   : > { %v264_v11 = vmul.f32 0.03125, %v263_v10 }
 0x17c   : > { %v265_v12 = vadd.f32 1e-05, %v264_v11 }
 0x17e   : > { %460 = vrsqrt.f32 %v265_v12 }
 0x188   : > { %v461_v13 = vpop.eup %460 }
 0x189   : > { %v267_v15 = vmul.f32 %v461_v13, %v260_v8 }
 0x18b   : > { %v275_v17 = vmul.f32 %v403_v14, %v267_v15 }
 0x18d   : > { %v283_v18 = vadd.f32 %v404_v16, %v275_v17 }
 0x18f   : > { %284 = vst [vmem:[%s249_s9] sm:$0xff] %v283_v18 }
 0x190   : > { %535 = shalt.err (!%p532_p1)
}
 0x191   : > { %s536_s25 = scalar_lea.hbm %s798_s20, 128  ;;  %s540_s26 = scalar_lea.hbm %s846_s4, 256 }
 0x192   : > { %p537_p11 = scmp.ne.s32.totalorder %s798_s20, %s536_s25  ;;  %p541_p4 = scmp.lt.u32.totalorder %s798_s20, %s846_s4 }
 0x193   : > { %p542_p10 = scmp.lt.u32.totalorder %s540_s26, %s536_s25  ;;  %p544_p13 = scmp.lt.u32.totalorder %s536_s25, %s798_s20 }
 0x194   : > { %p538_p12 = pnand %p537_p11, %p859_p3 }
 0x195   : > { %p543_p6 = por %p542_p10, %p541_p4 }
 0x196   : > { %p539_p2 = pneg %p538_p12 }
 0x197   : > { %p545_p7 = por %p544_p13, %p543_p6 }
 0x199   : > { %p546_p5 = pnand %p545_p7, %p539_p2 }
 0x19b   : > { %549 = shalt.err (!%p546_p5)
}
 0x19c   : > { %413 = dma.vmem_to_hbm [thread:$0]  (%p859_p3), %s800_s14, 128, %s798_s20, %s286_s22  }
 0x19d PF: > { %s311_s8 = sand.u32 1, %s580_s15   ;;  %p860_p8 = scmp.ne.s32.totalorder %s852_s28, 0 }
 0x19e   : > { %p861_p9 = scmp.ge.s32.totalorder %s592_s18, 2  ;;  %s312_s30 = scalar_lea.sflag [#allocation4], %s311_s8 }
 0x1a0   : > { %p423_p0 = pnand %p861_p9, %p860_p8 }
 0x1a2   : > { %575 = dma.done.wait (!%p423_p0), %s312_s30, 128  }
 0x1a3   : > { %577 = vsyncadd (!%p423_p0), %s312_s30, 4294967168  ;;  %p20_p1 = scmp.ge.s32.totalorder %s647_s21, 4   ;;  %s862_s15 = smov %s584_s16 }
 0x1a4   : > { %s863_s16 = smov %s588_s17  ;;  %s864_s17 = smov %s659_s24 }
 0x1a5   : > { %s865_s18 = smov %s647_s21  ;;  %22 = sbr.rel (!%p20_p1) target bundleno = 7 (0x7), region = 94 }
 0x1ac   :  { %317 = vsyncpa [#allocation3], 1 }
 0x1ad   :  { %319 = vsyncpa [#allocation3 + $0x1], 1 }
 0x1ae   :  { %320 = vsyncpa [#allocation6], 1 }
 0x1af   :  { %322 = vsyncpa [#allocation6 + $0x1], 1 }
 0x1b0   :  { %323 = vsyncpa [#allocation4], 1 }
 0x1b1   :  { %325 = vsyncpa [#allocation4 + $0x1], 1 }

</bundles_post_ra>
